<compile_context>
chip_gen: v6e
topology: v6e:2x2x1
jax: 0.10.0
libtpu: 0.0.40
codegen_flags: <defaults>
</compile_context>

<pallas_src>
import jax
import jax.numpy as jnp
from jax.experimental import pallas as pl
from jax.experimental.pallas import tpu as pltpu

_LANES = 128            # lane width of the tiled slab (unmasked vst)
_SMALL_MAX_ELEMS = 32768  # lane-unaligned inputs up to this size run as one block


def _sigmoid_kernel(x_ref, o_ref):
    x = x_ref[...]
    # sigmoid(x) == 0.5 * tanh(0.5 * x) + 0.5  (one EUP op, no divide)
    half = jnp.asarray(0.5, dtype=x.dtype)
    o_ref[...] = half * jnp.tanh(half * x) + half


def _pick_tm(itemsize):
    """Rows per block for the tiled path (generation-aware, dtype-aware)."""
    try:
        vmem = pltpu.get_tpu_info().vmem_capacity_bytes
    except Exception:  # pragma: no cover - conservative fallback
        vmem = 64 << 20
    # ~4 MiB blocks on 128 MiB-VMEM chips (v5e/v6e), ~2 MiB on v7x / unknown.
    block_bytes = (4 << 20) if vmem >= (96 << 20) else (2 << 20)
    tm = block_bytes // (_LANES * itemsize)
    # Keep rows a multiple of 32 (covers f32/bf16/int8 sublane packing).
    return max(256, (tm // 32) * 32)


def sigmoid_pallas(x):
    """Elementwise sigmoid over an arbitrary-shape tensor via a Pallas TPU kernel."""
    orig_shape = x.shape
    dtype = x.dtype
    flat = x.reshape(-1)
    total = flat.shape[0]
    tm = _pick_tm(jnp.dtype(dtype).itemsize)

    pad = 0
    if total % _LANES == 0:
        # Zero-copy lane-dense slab, no padding needed.
        x2d = flat.reshape(total // _LANES, _LANES)
    elif total <= _SMALL_MAX_ELEMS:
        # Tiny / awkward size (the spec case): single full-array block, no pad.
        if total % 8 == 0:
            x2d = flat.reshape(8, total // 8)
        else:
            x2d = flat.reshape(1, total)
    else:
        # Rare fallback: large and lane-unaligned -> pad by at most 127 elems.
        pad = (-total) % _LANES
        flat = jnp.pad(flat, (0, pad))
        x2d = flat.reshape((total + pad) // _LANES, _LANES)

    rows, cols = x2d.shape

    if cols != _LANES or rows <= tm:
        # Single launch, block == full array: no grid, no pipeline overhead.
        out2d = pl.pallas_call(
            _sigmoid_kernel,
            out_shape=jax.ShapeDtypeStruct((rows, cols), dtype),
        )(x2d)
    else:
        # Tiled, double-buffered streaming path; partial last block is masked.
        grid = (pl.cdiv(rows, tm),)
        out2d = pl.pallas_call(
            _sigmoid_kernel,
            out_shape=jax.ShapeDtypeStruct((rows, cols), dtype),
            grid=grid,
            in_specs=[pl.BlockSpec((tm, _LANES), lambda i: (i, 0))],
            out_specs=pl.BlockSpec((tm, _LANES), lambda i: (i, 0)),
            compiler_params=pltpu.CompilerParams(
                dimension_semantics=("parallel",),
                vmem_limit_bytes=32 << 20,
            ),
        )(x2d)

    if pad:
        return out2d.reshape(-1)[:total].reshape(orig_shape)
    return out2d.reshape(orig_shape)


if __name__ == "__main__":
    key = jax.random.PRNGKey(0)

    # Primary check: the module's spec shape [1, 336, 1, 1] (small path).
    x = jax.random.normal(key, (1, 336, 1, 1), dtype=jnp.float32)
    y = sigmoid_pallas(x)
    jax.block_until_ready(y)
    assert y.shape == x.shape
    assert jnp.allclose(y, jax.nn.sigmoid(x), atol=1e-6, rtol=1e-6)

    # Lane-aligned, single full-array block path.
    x2 = jax.random.normal(key, (2, 336, 16, 16), dtype=jnp.float32)
    y2 = sigmoid_pallas(x2)
    jax.block_until_ready(y2)
    assert jnp.allclose(y2, jax.nn.sigmoid(x2), atol=1e-6, rtol=1e-6)

    # Lane-aligned, tiled (grid >= 2) streaming path.
    x3 = jax.random.normal(key, (16, 336, 16, 16), dtype=jnp.float32)
    y3 = sigmoid_pallas(x3)
    jax.block_until_ready(y3)
    assert jnp.allclose(y3, jax.nn.sigmoid(x3), atol=1e-6, rtol=1e-6)

    print("KERNEL_OK")
</pallas_src>

<mosaic_0001>
module attributes {stable_mosaic.version = 11 : i64} {
  func.func @_sigmoid_kernel(%arg0: memref<8x42xf32, #tpu.memory_space<vmem>>, %arg1: memref<8x42xf32, #tpu.memory_space<vmem>>) attributes {dimension_semantics = [], scalar_prefetch = 0 : i64, scratch_operands = 0 : i64, tpu.core_type = #tpu.core_type<tc>} {
    %c0 = arith.constant 0 : index
    %c0_0 = arith.constant 0 : index
    %0 = vector.load %arg0[%c0, %c0_0] : memref<8x42xf32, #tpu.memory_space<vmem>>, vector<8x42xf32>
    %cst = arith.constant 5.000000e-01 : f32
    %1 = vector.broadcast %cst : f32 to vector<8x42xf32>
    %2 = arith.mulf %1, %0 : vector<8x42xf32>
    %3 = math.tanh %2 : vector<8x42xf32>
    %cst_1 = arith.constant 5.000000e-01 : f32
    %4 = vector.broadcast %cst_1 : f32 to vector<8x42xf32>
    %5 = arith.mulf %4, %3 : vector<8x42xf32>
    %cst_2 = arith.constant 5.000000e-01 : f32
    %6 = vector.broadcast %cst_2 : f32 to vector<8x42xf32>
    %7 = arith.addf %5, %6 : vector<8x42xf32>
    %c0_3 = arith.constant 0 : index
    %c0_4 = arith.constant 0 : index
    %8 = vector.load %arg1[%c0_3, %c0_4] : memref<8x42xf32, #tpu.memory_space<vmem>>, vector<8x42xf32>
    tpu.vector_store %arg1[%c0_3, %c0_4], %7 {strides = array<i32>} : memref<8x42xf32, #tpu.memory_space<vmem>>, vector<8x42xf32>,
    return
  }
}

</mosaic_0001>

<bundles_post_ra>
// kernel: tpu_custom_call.1
= control target key start
LH: loop header
LB: loop body
LE: loop exit
PB: predicated region body
PF: predicated region fallthrough
CT: control target
= control target key end

     0   :  { %6 = vsyncpa [#allocation3], 0  ;;  %s109_s0 = inlined_call_operand.hbm [shape: f32[8,42], index: 0, kind: input, shape index: {}]   ;;  %s110_s1 = inlined_call_operand.hbm [shape: f32[8,42], index: 1, kind: output, shape index: {}]  }
   0x1   :  { %7 = vsyncpa [#allocation4], 0  ;;  %s91_s6 = smov [#allocation2]  }
   0x2   :  { %s14_s7 = sshll.u32 %s91_s6, 4  ;;  %s15_s7 = int_to_ptr.vmem [resolvable:$true] %s14_s7 }
   0x3   :  { %s55_s8 = scalar_lea.vmem %s15_s7, 128  ;;  %p60_p1 = scmp.lt.s32.totalorder %s15_s7, %s15_s7 }
   0x4   :  { %p56_p0 = scmp.ne.s32.totalorder %s15_s7, %s55_s8  ;;  %p61_p2 = scmp.lt.s32.totalorder %s55_s8, %s55_s8 }
   0x6   :  { %p62_p3 = por %p61_p2, %p60_p1 }
   0x8   :  { %p63_p4 = pnand %p62_p3, %p56_p0 }
   0xa   :  { %66 = shalt.err (!%p63_p4)
}
   0xb   :  { %17 = dma.hbm_to_vmem [thread:$0]  %s109_s0, 128, %s15_s7, [#allocation3]  }
   0xc   :  { %87 = dma.done.wait [#allocation3], 128  }
   0xd   :  { %88 = vsyncadd [#allocation3], 4294967168  ;;  %v21_v0 = vld [vmem:[#allocation2] sm:$0xff]  ;;  %s92_s11 = smov [#allocation5]   ;;  %vm26_vm0 = vcmask 343040  }
   0xe   :  { %v22_v1 = vmul.f32 0.5, %v21_v0  ;;  %s34_s12 = sshll.u32 %s92_s11, 4  ;;  %s35_s12 = int_to_ptr.vmem [resolvable:$true] %s34_s12 }
   0xf   :  { %s67_s13 = scalar_lea.vmem %s35_s12, 128  ;;  %p72_p6 = scmp.lt.s32.totalorder %s35_s12, %s35_s12 }
  0x10   :  { %45 = vtanh.f32 %v22_v1  ;;  %p68_p5 = scmp.ne.s32.totalorder %s35_s12, %s67_s13  ;;  %p73_p7 = scmp.lt.s32.totalorder %s67_s13, %s67_s13 }
  0x12   :  { %p74_p8 = por %p73_p7, %p72_p6 }
  0x14   :  { %p75_p9 = pnand %p74_p8, %p68_p5 }
  0x1d   :  { %v46_v2 = vpop.eup %45 }
  0x1e   :  { %v24_v3 = vmul.f32 0.5, %v46_v2 }
  0x20   :  { %v25_v4 = vadd.f32 0.5, %v24_v3 }
  0x22   :  { %27 = vst.msk [vmem:[#allocation5] sm:$0xff] %vm26_vm0, %v25_v4 }
  0x23   :  { %78 = shalt.err (!%p75_p9)
}
  0x24   :  { %37 = dma.vmem_to_hbm [thread:$0]  %s35_s12, 128, %s110_s1, [#allocation4]  }
  0x25   :  { %89 = dma.done.wait [#allocation4], 128  }
  0x26   :  { %90 = vsyncadd [#allocation4], 4294967168 }
  0x27   :  { %41 = vsyncpa [#allocation3], 1 }
  0x28   :  { %42 = vsyncpa [#allocation4], 1 }

</bundles_post_ra>
